<compile_context>
chip_gen: v7x
topology: tpu7x:2x2x1
jax: 0.10.0
libtpu: 0.0.40
codegen_flags: <defaults>
</compile_context>

<pallas_src>
import functools
import math

import jax
import jax.numpy as jnp
from jax.experimental import pallas as pl
from jax.experimental.pallas import tpu as pltpu

IN_COMPONENTS = 30
OUT_COMPONENTS = 10

_SUBLANE = 8   # f32 sublane count: batch tiles are kept multiples of this.
_LANE = 128    # lane width; only used for the (advisory) cost estimate.


def _round_up(x, m):
    return ((x + m - 1) // m) * m


def _linear_kernel(x_ref, w_ref, b_ref, o_ref):
    # x_ref: (TB, K)   w_ref: (K, N)   b_ref: (1, N)   o_ref: (TB, N)
    acc = jnp.dot(x_ref[...], w_ref[...], preferred_element_type=jnp.float32)
    o_ref[...] = (acc + b_ref[...]).astype(o_ref.dtype)


def prepare_params(weight, bias, param_dtype):
    """Pre-transpose nn.Linear params once: weight (N, K) -> (K, N), bias -> (1, N)."""
    w_t = jnp.asarray(weight).T.astype(param_dtype)             # (K, N)
    b2 = jnp.asarray(bias).reshape(1, -1).astype(jnp.float32)   # (1, N), f32 add
    return w_t, b2


def _choose_batch_tile(batch, block_b):
    """Adaptive batch tile: balanced tiles, < one sublane of waste per step."""
    steps = pl.cdiv(batch, block_b)
    if steps <= 1:
        return batch, 1                      # single block == full array dim
    tb = _round_up(pl.cdiv(batch, steps), _SUBLANE)
    return tb, pl.cdiv(batch, tb)


def linear_model_forward(x, weight, bias, *, block_b=4096):
    """Forward pass of linearModel: flatten then affine.

    x:       (B, *feature_dims) with prod(feature_dims) == weight.shape[1]
    weight:  (OUT, IN)  (PyTorch nn.Linear convention)
    bias:    (OUT,)
    returns  (B, OUT) in x's dtype.
    """
    B = x.shape[0]
    # nn.Flatten().  NOTE: may be a relayout copy if x's trailing dims are
    # tile-padded in HBM — prefer handing in pre-flattened (B, K) data.
    x_flat = x.reshape(B, -1)
    K = x_flat.shape[1]
    N = weight.shape[0]
    assert K == weight.shape[1], (K, weight.shape)
    assert block_b % _SUBLANE == 0, "block_b must be a multiple of 8 (f32 sublanes)"

    out_dtype = x_flat.dtype
    w_t, b2 = prepare_params(weight, bias, param_dtype=x_flat.dtype)

    TB, steps = _choose_batch_tile(B, block_b)

    in_itemsize = jnp.dtype(x_flat.dtype).itemsize
    out_itemsize = jnp.dtype(out_dtype).itemsize
    cost = pl.CostEstimate(
        flops=2 * B * K * N,
        transcendentals=0,
        bytes_accessed=(B * _LANE * in_itemsize         # x rows are (8,128)-tile padded in HBM
                        + K * N * in_itemsize + N * 4   # resident W^T, bias
                        + B * N * out_itemsize),        # y: only valid lanes written
    )

    return pl.pallas_call(
        _linear_kernel,
        out_shape=jax.ShapeDtypeStruct((B, N), out_dtype),
        grid_spec=pltpu.PrefetchScalarGridSpec(
            num_scalar_prefetch=0,
            grid=(steps,),
            in_specs=[
                pl.BlockSpec((TB, K), lambda i: (i, 0)),   # x: streamed over batch
                pl.BlockSpec((K, N), lambda i: (0, 0)),    # W^T: VMEM-resident
                pl.BlockSpec((1, N), lambda i: (0, 0)),    # bias: VMEM-resident
            ],
            out_specs=pl.BlockSpec((TB, N), lambda i: (i, 0)),
        ),
        compiler_params=pltpu.CompilerParams(
            dimension_semantics=("parallel",)),            # shard batch steps on v7x's 2 TCs
        cost_estimate=cost,
    )(x_flat, w_t, b2)


def init_params(key, in_components=IN_COMPONENTS, out_components=OUT_COMPONENTS):
    """Deterministic init matching nn.Linear's default (uniform +/- 1/sqrt(fan_in))."""
    kw, kb = jax.random.split(key)
    bound = 1.0 / math.sqrt(in_components)
    weight = jax.random.uniform(
        kw, (out_components, in_components), jnp.float32, -bound, bound)
    bias = jax.random.uniform(
        kb, (out_components,), jnp.float32, -bound, bound)
    return weight, bias


if __name__ == "__main__":
    key = jax.random.PRNGKey(0)
    k_x, k_p = jax.random.split(key)

    weight, bias = init_params(k_p)

    # Small demo batch: (B, 5, 6) -> flattened feature dim = 30 = in_components.
    B = 37
    x = jax.random.normal(k_x, (B, 5, 6), jnp.float32)
    y_ref = x.reshape(B, -1) @ weight.T + bias

    # Multi-step + ragged-last-block path (block_b=16 -> TB=16, 3 grid steps,
    # last block clipped by Pallas).
    fwd_tiled = jax.jit(functools.partial(linear_model_forward, block_b=16))
    y = jax.block_until_ready(fwd_tiled(x, weight, bias))
    assert y.shape == (B, OUT_COMPONENTS) and y.dtype == x.dtype
    assert jnp.allclose(y, y_ref, atol=1e-5, rtol=1e-5)

    # Default single-step path (TB == B exactly) on a tiny batch.
    y_small = jax.block_until_ready(
        jax.jit(linear_model_forward)(x[:6], weight, bias))
    assert jnp.allclose(y_small, y_ref[:6], atol=1e-5, rtol=1e-5)

    print("KERNEL_OK")
</pallas_src>

<mosaic_0001>
module attributes {stable_mosaic.version = 11 : i64} {
  func.func @_linear_kernel(%arg0: i32, %arg1: memref<16x30xf32, #tpu.memory_space<vmem>>, %arg2: memref<30x10xf32, #tpu.memory_space<vmem>>, %arg3: memref<1x10xf32, #tpu.memory_space<vmem>>, %arg4: memref<16x10xf32, #tpu.memory_space<vmem>>) attributes {dimension_semantics = [#tpu.dimension_semantics<parallel>], iteration_bounds = array<i64: 3>, scalar_prefetch = 0 : i64, scratch_operands = 0 : i64, tpu.core_type = #tpu.core_type<tc>, window_params = [{transform_indices = @transform_0, window_bounds = array<i64: 16, 30>}, {pipeline_mode = #tpu.pipeline_mode<synchronous>, transform_indices = @transform_1, window_bounds = array<i64: 30, 10>}, {pipeline_mode = #tpu.pipeline_mode<synchronous>, transform_indices = @transform_2, window_bounds = array<i64: 1, 10>}, {transform_indices = @transform_3, window_bounds = array<i64: 16, 10>}]} {
    %c0 = arith.constant 0 : index
    %c0_0 = arith.constant 0 : index
    %0 = vector.load %arg1[%c0, %c0_0] : memref<16x30xf32, #tpu.memory_space<vmem>>, vector<16x30xf32>
    %c0_1 = arith.constant 0 : index
    %c0_2 = arith.constant 0 : index
    %1 = vector.load %arg2[%c0_1, %c0_2] : memref<30x10xf32, #tpu.memory_space<vmem>>, vector<30x10xf32>
    %cst = arith.constant dense<0.000000e+00> : vector<16x10xf32>
    %2 = tpu.matmul %0, %1, %cst {dimension_numbers = #tpu.dot_dimension_numbers<[1], [0], [0], [1], [0, 0, 1, 1], [], []>} : vector<16x30xf32>, vector<30x10xf32>, vector<16x10xf32> -> vector<16x10xf32>
    %c0_3 = arith.constant 0 : index
    %c0_4 = arith.constant 0 : index
    %3 = vector.load %arg3[%c0_3, %c0_4] : memref<1x10xf32, #tpu.memory_space<vmem>>, vector<1x10xf32>
    %4 = vector.broadcast %3 : vector<1x10xf32> to vector<16x10xf32>
    %5 = arith.addf %2, %4 : vector<16x10xf32>
    %c0_5 = arith.constant 0 : index
    %c0_6 = arith.constant 0 : index
    %6 = vector.load %arg4[%c0_5, %c0_6] : memref<16x10xf32, #tpu.memory_space<vmem>>, vector<16x10xf32>
    tpu.vector_store %arg4[%c0_5, %c0_6], %5 {strides = array<i32>} : memref<16x10xf32, #tpu.memory_space<vmem>>, vector<16x10xf32>,
    return
  }
  func.func @transform_0(%arg0: i32) -> (i32, i32) {
    %c0_i32 = arith.constant 0 : i32
    %c0_i32_0 = arith.constant 0 : i32
    return %arg0, %c0_i32 : i32, i32
  }
  func.func @transform_1(%arg0: i32) -> (i32, i32) {
    %c0_i32 = arith.constant 0 : i32
    %c0_i32_0 = arith.constant 0 : i32
    %c0_i32_1 = arith.constant 0 : i32
    return %c0_i32, %c0_i32_0 : i32, i32
  }
  func.func @transform_2(%arg0: i32) -> (i32, i32) {
    %c0_i32 = arith.constant 0 : i32
    %c0_i32_0 = arith.constant 0 : i32
    %c0_i32_1 = arith.constant 0 : i32
    return %c0_i32, %c0_i32_0 : i32, i32
  }
  func.func @transform_3(%arg0: i32) -> (i32, i32) {
    %c0_i32 = arith.constant 0 : i32
    %c0_i32_0 = arith.constant 0 : i32
    return %arg0, %c0_i32 : i32, i32
  }
}

</mosaic_0001>

<bundles_post_ra>
// kernel: linear_model_forward.1
= control target key start
LH: loop header
LB: loop body
LE: loop exit
PB: predicated region body
PF: predicated region fallthrough
CT: control target
= control target key end

     0   :  { %s769_s12 = smov 0   ;;  %s771_s13 = smov 0   ;;  %s867_s0 = inlined_call_operand.vmem [shape: f32[37,30], index: 0, kind: input, shape index: {}]   ;;  %s868_s1 = inlined_call_operand.vmem [shape: f32[30,10], index: 1, kind: input, shape index: {}]   ;;  %s869_s2 = inlined_call_operand.vmem [shape: f32[1,10], index: 2, kind: input, shape index: {}]   ;;  %s870_s3 = inlined_call_operand.vmem [shape: f32[37,10], index: 3, kind: output, shape index: {}]  }
   0x1   :  { %s773_s14 = smov 0  }
   0x2 LB: > { %s782_s15 = sadd.s32 4294967295, %s714_s14   ;;  %s784_s16 = sadd.s32 1, %s714_s14   ;;  %s714_s14 = sphi %s773_s14, %s874_s14   ;;  %s710_s13 = sphi %s771_s13, %s873_s13   ;;  %s706_s12 = sphi %s769_s12, %s872_s12  }
   0x3   : > { %s85_s17 = ssub.s32 %s714_s14, %s784_s16  ;;  %s88_s18 = sadd.s32 1, %s710_s13 }
   0x4   : > { %p86_p0 = scmp.eq.s32.totalorder %s85_s17, 0  ;;  %p98_p1 = scmp.ne.s32.totalorder %s710_s13, %s706_s12 }
   0x5   : > { %p99_p2 = scmp.eq.s32.totalorder %s782_s15, 2  ;;  %p516_p3 = scmp.ge.s32.totalorder %s714_s14, 1 }
   0x6   : > { %s792_s19 = scalar_select %p86_p0, %s710_s13, %s88_s18  }
   0x7   : > { %p794_p4 = por %p99_p2, %p98_p1  ;;  %p146_p5 = scmp.lt.s32.totalorder %s714_s14, 4 }
   0x9   : > { %p147_p6 = pnand %p516_p3, %p146_p5 }
   0xa   : > { %v194_v0 = vld [vmem:[%s868_s1] sm:$0xff] (!%p147_p6)  ;;  %v195_v1 = vld [vmem:[%s868_s1 + $0x8] sm:$0xff] (!%p147_p6)  ;;  %v196_v2 = vld [vmem:[%s868_s1 + $0x10] sm:$0xff] (!%p147_p6)  ;;  %vm212_vm0 = vcmask (!%p147_p6), 1045504   ;;  %s808_s27 = sshll.u32 (!%p147_p6), %s782_s15, 1  ;;  %vm748_vm1 = vmmov (!%p147_p6), 1  }
   0xb   : > { %150 = sbr.rel (%p147_p6) target bundleno = 289 (0x121), region = 32  ;;  %v561_v3 = vpack.c.bf16 (!%p147_p6), %v195_v1, %v194_v0  ;;  %v197_v4 = vld [vmem:[%s868_s1 + $0x18] sm:$0x3f] (!%p147_p6)  ;;  %p178_p7 = scmp.lt.s32.totalorder (!%p147_p6), %s808_s27, 4  ;;  %vm566_vm2 = vmpackc.low (!%p147_p6), %vm212_vm0, %vm748_vm1  ;;  %vm205_vm3 = vcmask (!%p147_p6), 244736   ;;  %vm291_vm4 = vcmask (!%p147_p6), 80896  }
   0xc   : > { %v565_v5 = vpack.c.bf16 (!%p147_p6), %v197_v4, %v196_v2  ;;  %s170_s8 = sand.u32 (!%p147_p6), 1, %s706_s12   ;;  %v520_v8 = vld [vmem:[%s869_s2] ss:$0 sm:$0xff] (!%p147_p6) }
   0xd   : > { %562 = vmatprep.subr.bf16.mxu0 (!%p147_p6), %v561_v3  ;;  %s517_s9 = sshll.u32 (!%p147_p6), %s170_s8, 4 }
   0xe   : > { %564 = vmatpush3.bf16.msra.mxu0 (!%p147_p6), %v561_v3  ;;  %s822_s14 = scalar_lea.vmem (!%p147_p6), [#allocation2], %s517_s9  }
   0xf   : > { %567 = vmatprep.subr.msk.bf16.mxu0 (!%p147_p6), %vm566_vm2, %v565_v5 }
  0x12   : > { %s179_s30 = scalar_select %p178_p7, %s808_s27, 4  ;;  %570 = vmatpush3.bf16.msk.msra.mxu0 %vm566_vm2, %v565_v5 }
  0x13   : > { %s302_s12 = ssub.s32 (%p794_p4), 5, %s808_s27  ;;  %s541_s17 = sshll.u32 (%p794_p4), %s782_s15, 4 }
  0x14   : > { %s519_s4 = sshll.u32 %s179_s30, 3  ;;  %p303_p8 = scmp.lt.s32.totalorder (%p794_p4), %s302_s12, 2 }
  0x15   : > { %s181_s7 = scalar_lea.vmem %s867_s0, %s519_s4  ;;  %s833_s22 = scalar_lea.vmem (%p794_p4), %s870_s3, %s541_s17  }
  0x16   : > { %v192_v6 = vld [vmem:[%s181_s7] sm:$0xff]  ;;  %v193_v7 = vld [vmem:[%s181_s7 + $0x8] sm:$0xff] }
  0x17   : > { %558 = vmatprep.mubr.msk.f32.mxu0 %vm205_vm3, %v192_v6 }
  0x18   : > { %559 = vmatmul.mubr.msk.f32.vlgmr.msra.gmra.mrb[0].mxu0 %vm205_vm3, %v193_v7 }
  0xe9   : > { %300 = sbr.rel (!%p794_p4) target bundleno = 289 (0x121), region = 36 }
  0xeb   : > { %v560_v9 = vpop.f32.mrb[0].mxu0 }
  0xec   : > { %v288_v10 = vadd.f32 %v560_v9, %v520_v8  ;;  %v282_v11 = vpop.f32.mrb[1].mxu0 }
  0xed   : > { %v283_v12 = vadd.f32 %v520_v8, %v282_v11 }
  0xee   : > { %293 = vst.msk [vmem:[%s822_s14 + $0x8] sm:$0xff] %vm291_vm4, %v288_v10 }
  0xef   : > { %292 = vst.msk [vmem:[%s822_s14] sm:$0xff] %vm291_vm4, %v283_v12 }
  0xf0   : > { %s876_s12 = smov (!%p303_p8, %s302_s12), 2 }
  0xf1   : > { %s526_s23 = sshll.u32 %s876_s12, 7 }
  0xf2   : > { %p529_p9 = scmp.eq.s32.totalorder %s526_s23, 0 }
  0xf3   : > { %s839_s24 = sshrl.u32 (!%p529_p9), %s876_s12, 1 }
  0xf4   : > { %311 = sbr.rel (%p529_p9) target bundleno = 289 (0x121), region = 40  ;;  %p530_p10 = scmp.le.s32.totalorder (!%p529_p9), %s839_s24, 0 }
  0xfb   : > { %469 = sbr.rel (%p530_p10) target bundleno = 268 (0x10c), region = 116  ;;  %s716_s15 = smov (!%p530_p10), %s833_s22  }
  0xfc   : > { %s720_s20 = smov (!%p530_p10), %s822_s14   ;;  %s724_s25 = smov (!%p530_p10), 0  }
  0xfd   : > { %s728_s26 = smov (!%p530_p10), 0  }
 0x102 LB: >> { %v375_v13 = vld [vmem:[%s722_s20] sm:$0xff]  ;;  %v377_v14 = vld [vmem:[%s722_s20 + $0x8] sm:$0xff]  ;;  %s379_s27 = sadd.s32 1, %s726_s25  ;;  %s369_s26 = sadd.s32 1, %s730_s26   ;;  %s730_s26 = sphi %s728_s26, %s369_s26   ;;  %s726_s25 = sphi %s724_s25, %s725_s25   ;;  %s722_s20 = sphi %s720_s20, %s384_s20   ;;  %s718_s15 = sphi %s716_s15, %s385_s15  }
 0x103   : >> { %376 = vst [vmem:[%s718_s15] sm:$0xff] %v375_v13  ;;  %378 = vst [vmem:[%s718_s15 + $0x8] sm:$0xff] %v377_v14  ;;  %p380_p11 = scmp.ge.s32.totalorder %s379_s27, %s839_s24  ;;  %p368_p12 = scmp.ge.s32.totalorder %s369_s26, %s839_s24 }
 0x105   : >> { %s878_s27 = smov (%p380_p11, %s379_s27), 0  ;;  %371 = sbr.rel (!%p368_p12) target bundleno = 258 (0x102), region = 122 }
 0x106   : >> { %s531_s28 = sshll.u32 %s878_s27, 4  ;;  %s725_s25 = smov %s878_s27  }
 0x107   : >> { %s384_s20 = scalar_lea.vmem %s822_s14, %s531_s28 [#allocation2]   ;;  %s385_s15 = scalar_lea.vmem %s833_s22, %s531_s28  }
 0x10c PF: > { %s849_s29 = sand.u32 1, %s876_s12   ;;  %s542_s30 = sshll.u32 %s839_s24, 4 }
 0x10d   : > { %s390_s4 = scalar_lea.vmem %s822_s14, %s542_s30 [#allocation2]   ;;  %s392_s5 = scalar_lea.vmem %s833_s22, %s542_s30  }
 0x10e   : > { %p536_p13 = scmp.le.s32.totalorder %s849_s29, 0 }
 0x10f   : > { %s732_s6 = smov (!%p536_p13), %s392_s5   ;;  %s736_s7 = smov (!%p536_p13), %s390_s4  }
 0x110   : > { %483 = sbr.rel (%p536_p13) target bundleno = 289 (0x121), region = 127  ;;  %s740_s8 = smov (!%p536_p13), 0  }
 0x111   : > { %s744_s9 = smov (!%p536_p13), 0  }
 0x117 LB: >> { %v402_v15 = vld [vmem:[%s738_s7] sm:$0xff]  ;;  %s404_s10 = sadd.s32 1, %s742_s8  ;;  %s396_s9 = sadd.s32 1, %s746_s9   ;;  %s746_s9 = sphi %s744_s9, %s396_s9   ;;  %s742_s8 = sphi %s740_s8, %s741_s8   ;;  %s738_s7 = sphi %s736_s7, %s409_s7   ;;  %s734_s6 = sphi %s732_s6, %s410_s6  }
 0x118   : >> { %403 = vst [vmem:[%s734_s6] sm:$0xff] %v402_v15  ;;  %p405_p0 = scmp.ge.s32.totalorder %s404_s10, %s849_s29  ;;  %p395_p1 = scmp.ge.s32.totalorder %s396_s9, %s849_s29 }
 0x11a   : >> { %s880_s10 = smov (%p405_p0, %s404_s10), 0  ;;  %398 = sbr.rel (!%p395_p1) target bundleno = 279 (0x117), region = 133 }
 0x11b   : >> { %s537_s11 = sshll.u32 %s880_s10, 3  ;;  %s741_s8 = smov %s880_s10  }
 0x11c   : >> { %s409_s7 = scalar_lea.vmem %s390_s4, %s537_s11 [#allocation2]   ;;  %s410_s6 = scalar_lea.vmem %s392_s5, %s537_s11  }
 0x121 PF: > { %p10_p2 = scmp.ge.s32.totalorder %s784_s16, 5   ;;  %s872_s12 = smov %s710_s13 }
 0x122   : > { %s873_s13 = smov %s792_s19  ;;  %s874_s14 = smov %s784_s16 }
 0x123   :  { %12 = sbr.rel (!%p10_p2) target bundleno = 2 (0x2), region = 144 }

</bundles_post_ra>
